<compile_context>
chip_gen: v7x
topology: tpu7x:2x2x1
jax: 0.10.0
libtpu: 0.0.40
codegen_flags: <defaults>
</compile_context>

<pallas_src>
import math
from functools import partial

import jax
import jax.numpy as jnp
from jax import lax
from jax.experimental import pallas as pl
from jax.experimental.pallas import tpu as pltpu


def make_pe_cache(d_model: int, max_seq_len: int) -> jax.Array:
    """Builds the module buffer `self.pe` (1, max_seq_len, d_model).

    Mirrors espnet's LegacyRelPositionalEncoding.extend_pe (reversed positions).
    This is __init__-time work in the PyTorch module, not forward-pass work.
    """
    position = jnp.arange(max_seq_len - 1, -1, -1.0, dtype=jnp.float32)[:, None]
    div_term = jnp.exp(
        jnp.arange(0, d_model, 2, dtype=jnp.float32) * -(math.log(10000.0) / d_model)
    )
    pe = jnp.zeros((max_seq_len, d_model), jnp.float32)
    pe = pe.at[:, 0::2].set(jnp.sin(position * div_term))
    pe = pe.at[:, 1::2].set(jnp.cos(position * div_term))
    return pe[None]  # (1, max_seq_len, d_model)


def _scale_kernel(x_ref, o_ref, *, xscale):
    # Single hot path: elementwise scale of x in its own dtype (memory bound).
    o_ref[...] = x_ref[...] * jnp.asarray(xscale, x_ref.dtype)


# Double-buffered in+out blocks must stay under v5e's 16 MiB default scoped
# VMEM limit (v6e/v7x default to 32 MiB, so this is the binding one).
_VMEM_BUDGET_BYTES = 12 * 1024 * 1024


def _round_down(x, m):
    return (x // m) * m


def _round_up(x, m):
    return ((x + m - 1) // m) * m


def _has_multiple_tensorcores() -> bool:
    """True on chips with >1 TensorCore sharing the grid (v7x, v4 megacore)."""
    try:
        kind = jax.devices()[0].device_kind.lower()
    except Exception:  # pragma: no cover - defensive; default to single-TC path
        return False
    return ("v7" in kind) or ("v4" in kind)


def _pick_tiling(B, T, D, itemsize, requested):
    """Returns (batch_block, time_tile).

    time_tile is aligned to the dtype's sublane packing and capped so the
    double-buffered in+out working set fits the portable VMEM budget.
    """
    align = max(8, 32 // max(1, itemsize))  # 8 rows f32, 16 bf16, 32 int8/fp8
    want = max(align, _round_down(int(requested), align))
    want = min(want, T) if T >= align else T

    def tile_cap(bb):
        # 2 buffers (double-buffering) x 2 streams (in + out) x bb*tile*D*itemsize
        per_row = 4 * bb * D * itemsize
        return max(align, _round_down(_VMEM_BUDGET_BYTES // per_row, align))

    # Keep the whole batch in one block unless that would shrink the time tile;
    # otherwise batch gets its own (parallel) grid axis -> per-block VMEM is
    # independent of B.
    bb = B if tile_cap(B) >= want else 1
    tile = min(want, tile_cap(bb))
    if tile >= T:
        tile = T  # full-extent time block is always legal

    # On multi-TensorCore chips make sure there are >=2 parallel work units so
    # both cores get a share of the HBM stream.  Single-TC chips (v5e/v6e) keep
    # one maximal tile and skip the extra grid-step overhead.
    if _has_multiple_tensorcores():
        n_units = pl.cdiv(B, bb) * pl.cdiv(T, tile)
        if n_units < 2:
            if B >= 2:
                bb = 1
            elif T > align:
                tile = min(tile, _round_up((T + 1) // 2, align))

    return bb, tile


def onnx_legacy_rel_positional_encoding(x, pe_cache, *, time_tile=1024, donate_x=False):
    """x: (B, T, D). pe_cache: (1, max_seq_len, D) module buffer.

    Returns (x * sqrt(D), pe_cache[:, :T]) — the module's forward outputs.
    """
    B, T, D = x.shape
    _, max_seq_len, Dp = pe_cache.shape
    assert Dp == D, "pe cache d_model mismatch"
    assert T <= max_seq_len, "sequence longer than the positional-encoding cache"

    xscale = math.sqrt(D)
    itemsize = jnp.dtype(x.dtype).itemsize
    bb, tile = _pick_tiling(B, T, D, itemsize, time_tile)
    grid = (pl.cdiv(B, bb), pl.cdiv(T, tile))

    x_scaled = pl.pallas_call(
        partial(_scale_kernel, xscale=xscale),
        out_shape=jax.ShapeDtypeStruct((B, T, D), x.dtype),
        grid_spec=pltpu.PrefetchScalarGridSpec(
            num_scalar_prefetch=0,
            grid=grid,
            in_specs=[pl.BlockSpec((bb, tile, D), lambda b, i: (b, i, 0))],
            out_specs=pl.BlockSpec((bb, tile, D), lambda b, i: (b, i, 0)),
        ),
        compiler_params=pltpu.CompilerParams(
            dimension_semantics=("parallel", "parallel"),
        ),
        input_output_aliases=({0: 0} if donate_x else {}),
    )(x)

    # pos_emb is a contiguous prefix of the cached buffer: emit it as a
    # wrapper-level slice instead of streaming it through the kernel
    # (bit-exact, and saves 2*T*D*4 bytes of read+write HBM traffic plus a
    # whole DMA pipeline stream).
    pos_emb = lax.slice(pe_cache, (0, 0, 0), (1, T, D))
    return x_scaled, pos_emb


def _reference(x, pe_cache):
    """Pure-JAX reference mirroring the PyTorch forward (use_cache=True)."""
    B, T, D = x.shape
    return x * math.sqrt(D), pe_cache[:, :T]


if __name__ == "__main__":
    B, T, D = 2, 200, 128          # non-tile-divisible T exercises the cdiv/masked path
    MAX_SEQ_LEN = 512

    key = jax.random.PRNGKey(0)
    x = jax.random.normal(key, (B, T, D), dtype=jnp.float32)

    # Module "buffer" built once, like extend_pe() at __init__ time.
    pe_cache = make_pe_cache(D, MAX_SEQ_LEN)

    x_scaled, pos_emb = onnx_legacy_rel_positional_encoding(x, pe_cache)
    jax.block_until_ready((x_scaled, pos_emb))

    x_ref, pe_ref = _reference(x, pe_cache)
    assert x_scaled.shape == (B, T, D) and pos_emb.shape == (1, T, D)
    assert jnp.allclose(x_scaled, x_ref, atol=1e-5, rtol=1e-5)
    assert jnp.array_equal(pos_emb, pe_ref)   # bit-exact: wrapper slice of the cache

    print("KERNEL_OK")
</pallas_src>

<mosaic_0001>
module attributes {stable_mosaic.version = 11 : i64} {
  func.func @_scale_kernel(%arg0: i32, %arg1: i32, %arg2: memref<2x200x128xf32, #tpu.memory_space<vmem>>, %arg3: memref<2x200x128xf32, #tpu.memory_space<vmem>>) attributes {dimension_semantics = [#tpu.dimension_semantics<parallel>, #tpu.dimension_semantics<parallel>], iteration_bounds = array<i64: 1, 1>, scalar_prefetch = 0 : i64, scratch_operands = 0 : i64, tpu.core_type = #tpu.core_type<tc>, window_params = [{transform_indices = @transform_0, window_bounds = array<i64: 2, 200, 128>}, {transform_indices = @transform_1, window_bounds = array<i64: 2, 200, 128>}]} {
    %c0 = arith.constant 0 : index
    %c0_0 = arith.constant 0 : index
    %c0_1 = arith.constant 0 : index
    %0 = vector.load %arg2[%c0, %c0_0, %c0_1] : memref<2x200x128xf32, #tpu.memory_space<vmem>>, vector<2x200x128xf32>
    %cst = arith.constant 11.3137083 : f32
    %1 = vector.broadcast %cst : f32 to vector<2x200x128xf32>
    %2 = arith.mulf %0, %1 : vector<2x200x128xf32>
    %c0_2 = arith.constant 0 : index
    %c0_3 = arith.constant 0 : index
    %c0_4 = arith.constant 0 : index
    %3 = vector.load %arg3[%c0_2, %c0_3, %c0_4] : memref<2x200x128xf32, #tpu.memory_space<vmem>>, vector<2x200x128xf32>
    tpu.vector_store %arg3[%c0_2, %c0_3, %c0_4], %2 {strides = array<i32>} : memref<2x200x128xf32, #tpu.memory_space<vmem>>, vector<2x200x128xf32>,
    return
  }
  func.func @transform_0(%arg0: i32, %arg1: i32) -> (i32, i32, i32) {
    %c0_i32 = arith.constant 0 : i32
    %c0_i32_0 = arith.constant 0 : i32
    return %arg0, %arg1, %c0_i32 : i32, i32, i32
  }
  func.func @transform_1(%arg0: i32, %arg1: i32) -> (i32, i32, i32) {
    %c0_i32 = arith.constant 0 : i32
    %c0_i32_0 = arith.constant 0 : i32
    return %arg0, %arg1, %c0_i32 : i32, i32, i32
  }
}

</mosaic_0001>

<bundles_post_ra>
// kernel: tpu_custom_call.1
= control target key start
LH: loop header
LB: loop body
LE: loop exit
PB: predicated region body
PF: predicated region fallthrough
CT: control target
= control target key end

     0   :  { %6 = vsyncpa [#allocation3], 0  ;;  %s286_s0 = inlined_call_operand.hbm [shape: f32[2,200,128], index: 0, kind: input, shape index: {}]   ;;  %s287_s1 = inlined_call_operand.hbm [shape: f32[2,200,128], index: 1, kind: output, shape index: {}]  }
   0x1   :  { %7 = vsyncpa [#allocation4], 0  ;;  %s242_s6 = smov [#allocation2]   ;;  %s194_s10 = scalar_lea.hbm %s286_s0, 6400 }
   0x2   :  { %s13_s7 = sshll.u32 %s242_s6, 4  ;;  %p195_p0 = scmp.ne.s32.totalorder %s286_s0, %s194_s10  ;;  %s14_s7 = int_to_ptr.vmem [resolvable:$true] %s13_s7 }
   0x3   :  { %p198_p1 = scmp.lt.u32.totalorder %s194_s10, %s286_s0 }
   0x5   :  { %p200_p2 = pnand %p198_p1, %p195_p0 }
   0x7   :  { %203 = shalt.err (!%p200_p2)
}
   0x8   :  { %s204_s15 = scalar_lea.vmem %s14_s7, 6400  ;;  %p209_p4 = scmp.lt.s32.totalorder %s14_s7, %s14_s7 }
   0x9   :  { %p205_p3 = scmp.ne.s32.totalorder %s14_s7, %s204_s15  ;;  %p210_p5 = scmp.lt.s32.totalorder %s204_s15, %s204_s15 }
   0xb   :  { %p211_p6 = por %p210_p5, %p209_p4 }
   0xd   :  { %p212_p7 = pnand %p211_p6, %p205_p3 }
   0xf   :  { %215 = shalt.err (!%p212_p7)
}
  0x10   :  { %s243_s16 = smov 128   ;;  %s244_s17 = smov 8  }
  0x11   :  { %19 = dma.hbm_to_vmem [thread:$0]  %s286_s0, 6400, %s14_s7, [#allocation3], %s243_s16, %s243_s16, %s244_s17  }
  0x12   :  { %238 = dma.done.wait [#allocation3], 6400  }
  0x13   :  { %239 = vsyncadd [#allocation3], 4294960896  ;;  %v23_v0 = vld [vmem:[#allocation2] sm:$0xff]  ;;  %v24_v1 = vld [vmem:[#allocation2 + $0x8] sm:$0xff]  ;;  %s245_s0 = smov [#allocation5]  }
  0x14   :  { %v25_v2 = vld [vmem:[#allocation2 + $0x10] sm:$0xff]  ;;  %v73_v3 = vmul.f32 11.313708, %v23_v0  ;;  %v74_v4 = vmul.f32 11.313708, %v24_v1  ;;  %v26_v6 = vld [vmem:[#allocation2 + $0x18] sm:$0xff] }
  0x15   :  { %v75_v5 = vmul.f32 11.313708, %v25_v2  ;;  %v27_v7 = vld [vmem:[#allocation2 + $0x20] sm:$0xff]  ;;  %v28_v8 = vld [vmem:[#allocation2 + $0x28] sm:$0xff]  ;;  %v76_v9 = vmul.f32 11.313708, %v26_v6 }
  0x16   :  { %123 = vst [vmem:[#allocation5] sm:$0xff] %v73_v3  ;;  %124 = vst [vmem:[#allocation5 + $0x8] sm:$0xff] %v74_v4  ;;  %v77_v10 = vmul.f32 11.313708, %v27_v7  ;;  %v78_v11 = vmul.f32 11.313708, %v28_v8 }
  0x17   :  { %125 = vst [vmem:[#allocation5 + $0x10] sm:$0xff] %v75_v5  ;;  %v29_v12 = vld [vmem:[#allocation2 + $0x30] sm:$0xff]  ;;  %v30_v13 = vld [vmem:[#allocation2 + $0x38] sm:$0xff]  ;;  %v31_v14 = vld [vmem:[#allocation2 + $0x40] sm:$0xff]  ;;  %s178_s20 = sshll.u32 %s245_s0, 4  ;;  %s179_s20 = int_to_ptr.vmem [resolvable:$true] %s178_s20 }
  0x18   :  { %126 = vst [vmem:[#allocation5 + $0x18] sm:$0xff] %v76_v9  ;;  %127 = vst [vmem:[#allocation5 + $0x20] sm:$0xff] %v77_v10  ;;  %v79_v15 = vmul.f32 11.313708, %v29_v12  ;;  %v80_v16 = vmul.f32 11.313708, %v30_v13  ;;  %p221_p9 = scmp.lt.s32.totalorder %s179_s20, %s179_s20 }
  0x19   :  { %128 = vst [vmem:[#allocation5 + $0x28] sm:$0xff] %v78_v11  ;;  %v81_v17 = vmul.f32 11.313708, %v31_v14  ;;  %v32_v18 = vld [vmem:[#allocation2 + $0x48] sm:$0xff]  ;;  %v33_v19 = vld [vmem:[#allocation2 + $0x50] sm:$0xff]  ;;  %v34_v20 = vld [vmem:[#allocation2 + $0x58] sm:$0xff] }
  0x1a   :  { %129 = vst [vmem:[#allocation5 + $0x30] sm:$0xff] %v79_v15  ;;  %130 = vst [vmem:[#allocation5 + $0x38] sm:$0xff] %v80_v16  ;;  %v82_v21 = vmul.f32 11.313708, %v32_v18  ;;  %v83_v22 = vmul.f32 11.313708, %v33_v19 }
  0x1b   :  { %131 = vst [vmem:[#allocation5 + $0x40] sm:$0xff] %v81_v17  ;;  %v84_v23 = vmul.f32 11.313708, %v34_v20  ;;  %v35_v24 = vld [vmem:[#allocation2 + $0x60] sm:$0xff]  ;;  %v36_v25 = vld [vmem:[#allocation2 + $0x68] sm:$0xff]  ;;  %v37_v26 = vld [vmem:[#allocation2 + $0x70] sm:$0xff] }
  0x1c   :  { %132 = vst [vmem:[#allocation5 + $0x48] sm:$0xff] %v82_v21  ;;  %133 = vst [vmem:[#allocation5 + $0x50] sm:$0xff] %v83_v22  ;;  %v85_v27 = vmul.f32 11.313708, %v35_v24  ;;  %v86_v28 = vmul.f32 11.313708, %v36_v25 }
  0x1d   :  { %134 = vst [vmem:[#allocation5 + $0x58] sm:$0xff] %v84_v23  ;;  %v87_v29 = vmul.f32 11.313708, %v37_v26  ;;  %v38_v30 = vld [vmem:[#allocation2 + $0x78] sm:$0xff]  ;;  %v39_v31 = vld [vmem:[#allocation2 + $0x80] sm:$0xff]  ;;  %v40_v32 = vld [vmem:[#allocation2 + $0x88] sm:$0xff] }
  0x1e   :  { %135 = vst [vmem:[#allocation5 + $0x60] sm:$0xff] %v85_v27  ;;  %136 = vst [vmem:[#allocation5 + $0x68] sm:$0xff] %v86_v28  ;;  %v88_v33 = vmul.f32 11.313708, %v38_v30  ;;  %v89_v34 = vmul.f32 11.313708, %v39_v31 }
  0x1f   :  { %137 = vst [vmem:[#allocation5 + $0x70] sm:$0xff] %v87_v29  ;;  %v90_v35 = vmul.f32 11.313708, %v40_v32  ;;  %v41_v36 = vld [vmem:[#allocation2 + $0x90] sm:$0xff]  ;;  %v42_v37 = vld [vmem:[#allocation2 + $0x98] sm:$0xff]  ;;  %v43_v38 = vld [vmem:[#allocation2 + $0xa0] sm:$0xff] }
  0x20   :  { %138 = vst [vmem:[#allocation5 + $0x78] sm:$0xff] %v88_v33  ;;  %139 = vst [vmem:[#allocation5 + $0x80] sm:$0xff] %v89_v34  ;;  %v91_v39 = vmul.f32 11.313708, %v41_v36  ;;  %v92_v40 = vmul.f32 11.313708, %v42_v37 }
  0x21   :  { %140 = vst [vmem:[#allocation5 + $0x88] sm:$0xff] %v90_v35  ;;  %v93_v41 = vmul.f32 11.313708, %v43_v38  ;;  %v44_v42 = vld [vmem:[#allocation2 + $0xa8] sm:$0xff]  ;;  %v45_v43 = vld [vmem:[#allocation2 + $0xb0] sm:$0xff]  ;;  %v46_v44 = vld [vmem:[#allocation2 + $0xb8] sm:$0xff] }
  0x22   :  { %141 = vst [vmem:[#allocation5 + $0x90] sm:$0xff] %v91_v39  ;;  %142 = vst [vmem:[#allocation5 + $0x98] sm:$0xff] %v92_v40  ;;  %v94_v45 = vmul.f32 11.313708, %v44_v42  ;;  %v95_v46 = vmul.f32 11.313708, %v45_v43 }
  0x23   :  { %143 = vst [vmem:[#allocation5 + $0xa0] sm:$0xff] %v93_v41  ;;  %v96_v47 = vmul.f32 11.313708, %v46_v44  ;;  %v47_v48 = vld [vmem:[#allocation2 + $0xc0] sm:$0xff]  ;;  %v48_v49 = vld [vmem:[#allocation2 + $0xc8] sm:$0xff]  ;;  %v49_v50 = vld [vmem:[#allocation2 + $0xd0] sm:$0xff] }
  0x24   :  { %144 = vst [vmem:[#allocation5 + $0xa8] sm:$0xff] %v94_v45  ;;  %145 = vst [vmem:[#allocation5 + $0xb0] sm:$0xff] %v95_v46  ;;  %v97_v51 = vmul.f32 11.313708, %v47_v48  ;;  %v98_v52 = vmul.f32 11.313708, %v48_v49 }
  0x25   :  { %146 = vst [vmem:[#allocation5 + $0xb8] sm:$0xff] %v96_v47  ;;  %v99_v53 = vmul.f32 11.313708, %v49_v50  ;;  %v50_v54 = vld [vmem:[#allocation2 + $0xd8] sm:$0xff]  ;;  %v51_v55 = vld [vmem:[#allocation2 + $0xe0] sm:$0xff]  ;;  %v52_v56 = vld [vmem:[#allocation2 + $0xe8] sm:$0xff] }
  0x26   :  { %147 = vst [vmem:[#allocation5 + $0xc0] sm:$0xff] %v97_v51  ;;  %148 = vst [vmem:[#allocation5 + $0xc8] sm:$0xff] %v98_v52  ;;  %v100_v57 = vmul.f32 11.313708, %v50_v54  ;;  %v101_v58 = vmul.f32 11.313708, %v51_v55 }
  0x27   :  { %149 = vst [vmem:[#allocation5 + $0xd0] sm:$0xff] %v99_v53  ;;  %v102_v59 = vmul.f32 11.313708, %v52_v56  ;;  %v53_v60 = vld [vmem:[#allocation2 + $0xf0] sm:$0xff]  ;;  %v54_v61 = vld [vmem:[#allocation2 + $0xf8] sm:$0xff]  ;;  %v55_v62 = vld [vmem:[#allocation2 + $0x100] sm:$0xff] }
  0x28   :  { %150 = vst [vmem:[#allocation5 + $0xd8] sm:$0xff] %v100_v57  ;;  %151 = vst [vmem:[#allocation5 + $0xe0] sm:$0xff] %v101_v58  ;;  %v103_v63 = vmul.f32 11.313708, %v53_v60  ;;  %v104_v0 = vmul.f32 11.313708, %v54_v61 }
  0x29   :  { %152 = vst [vmem:[#allocation5 + $0xe8] sm:$0xff] %v102_v59  ;;  %v105_v1 = vmul.f32 11.313708, %v55_v62  ;;  %v56_v2 = vld [vmem:[#allocation2 + $0x108] sm:$0xff]  ;;  %v57_v3 = vld [vmem:[#allocation2 + $0x110] sm:$0xff]  ;;  %v58_v4 = vld [vmem:[#allocation2 + $0x118] sm:$0xff] }
  0x2a   :  { %153 = vst [vmem:[#allocation5 + $0xf0] sm:$0xff] %v103_v63  ;;  %154 = vst [vmem:[#allocation5 + $0xf8] sm:$0xff] %v104_v0  ;;  %v106_v5 = vmul.f32 11.313708, %v56_v2  ;;  %v107_v6 = vmul.f32 11.313708, %v57_v3 }
  0x2b   :  { %155 = vst [vmem:[#allocation5 + $0x100] sm:$0xff] %v105_v1  ;;  %v108_v7 = vmul.f32 11.313708, %v58_v4  ;;  %v59_v8 = vld [vmem:[#allocation2 + $0x120] sm:$0xff]  ;;  %v60_v9 = vld [vmem:[#allocation2 + $0x128] sm:$0xff]  ;;  %v61_v10 = vld [vmem:[#allocation2 + $0x130] sm:$0xff] }
  0x2c   :  { %156 = vst [vmem:[#allocation5 + $0x108] sm:$0xff] %v106_v5  ;;  %157 = vst [vmem:[#allocation5 + $0x110] sm:$0xff] %v107_v6  ;;  %v109_v11 = vmul.f32 11.313708, %v59_v8  ;;  %v110_v12 = vmul.f32 11.313708, %v60_v9 }
  0x2d   :  { %158 = vst [vmem:[#allocation5 + $0x118] sm:$0xff] %v108_v7  ;;  %v111_v13 = vmul.f32 11.313708, %v61_v10  ;;  %v62_v14 = vld [vmem:[#allocation2 + $0x138] sm:$0xff]  ;;  %v63_v15 = vld [vmem:[#allocation2 + $0x140] sm:$0xff]  ;;  %v64_v16 = vld [vmem:[#allocation2 + $0x148] sm:$0xff] }
  0x2e   :  { %159 = vst [vmem:[#allocation5 + $0x120] sm:$0xff] %v109_v11  ;;  %160 = vst [vmem:[#allocation5 + $0x128] sm:$0xff] %v110_v12  ;;  %v112_v17 = vmul.f32 11.313708, %v62_v14  ;;  %v113_v18 = vmul.f32 11.313708, %v63_v15 }
  0x2f   :  { %161 = vst [vmem:[#allocation5 + $0x130] sm:$0xff] %v111_v13  ;;  %v114_v19 = vmul.f32 11.313708, %v64_v16  ;;  %v65_v20 = vld [vmem:[#allocation2 + $0x150] sm:$0xff]  ;;  %v66_v21 = vld [vmem:[#allocation2 + $0x158] sm:$0xff]  ;;  %v67_v22 = vld [vmem:[#allocation2 + $0x160] sm:$0xff] }
  0x30   :  { %162 = vst [vmem:[#allocation5 + $0x138] sm:$0xff] %v112_v17  ;;  %163 = vst [vmem:[#allocation5 + $0x140] sm:$0xff] %v113_v18  ;;  %v115_v23 = vmul.f32 11.313708, %v65_v20  ;;  %v116_v24 = vmul.f32 11.313708, %v66_v21 }
  0x31   :  { %164 = vst [vmem:[#allocation5 + $0x148] sm:$0xff] %v114_v19  ;;  %v117_v25 = vmul.f32 11.313708, %v67_v22  ;;  %v68_v26 = vld [vmem:[#allocation2 + $0x168] sm:$0xff]  ;;  %v69_v27 = vld [vmem:[#allocation2 + $0x170] sm:$0xff]  ;;  %v70_v28 = vld [vmem:[#allocation2 + $0x178] sm:$0xff] }
  0x32   :  { %165 = vst [vmem:[#allocation5 + $0x150] sm:$0xff] %v115_v23  ;;  %166 = vst [vmem:[#allocation5 + $0x158] sm:$0xff] %v116_v24  ;;  %v118_v29 = vmul.f32 11.313708, %v68_v26  ;;  %v119_v30 = vmul.f32 11.313708, %v69_v27 }
  0x33   :  { %167 = vst [vmem:[#allocation5 + $0x160] sm:$0xff] %v117_v25  ;;  %v120_v31 = vmul.f32 11.313708, %v70_v28  ;;  %v71_v32 = vld [vmem:[#allocation2 + $0x180] sm:$0xff]  ;;  %v72_v33 = vld [vmem:[#allocation2 + $0x188] sm:$0xff]  ;;  %s216_s21 = scalar_lea.vmem %s179_s20, 6400 }
  0x34   :  { %168 = vst [vmem:[#allocation5 + $0x168] sm:$0xff] %v118_v29  ;;  %169 = vst [vmem:[#allocation5 + $0x170] sm:$0xff] %v119_v30  ;;  %v121_v34 = vmul.f32 11.313708, %v71_v32  ;;  %v122_v35 = vmul.f32 11.313708, %v72_v33  ;;  %p217_p8 = scmp.ne.s32.totalorder %s179_s20, %s216_s21  ;;  %p222_p10 = scmp.lt.s32.totalorder %s216_s21, %s216_s21 }
  0x35   :  { %170 = vst [vmem:[#allocation5 + $0x178] sm:$0xff] %v120_v31 }
  0x36   :  { %171 = vst [vmem:[#allocation5 + $0x180] sm:$0xff] %v121_v34  ;;  %172 = vst [vmem:[#allocation5 + $0x188] sm:$0xff] %v122_v35  ;;  %p223_p11 = por %p222_p10, %p221_p9 }
  0x38   :  { %p224_p12 = pnand %p223_p11, %p217_p8 }
  0x3a   :  { %227 = shalt.err (!%p224_p12)
}
  0x3b   :  { %s228_s24 = scalar_lea.hbm %s287_s1, 6400 }
  0x3c   :  { %p229_p13 = scmp.ne.s32.totalorder %s287_s1, %s228_s24  ;;  %p232_p0 = scmp.lt.u32.totalorder %s228_s24, %s287_s1 }
  0x3e   :  { %p234_p1 = pnand %p232_p0, %p229_p13 }
  0x40   :  { %237 = shalt.err (!%p234_p1)
}
  0x41   :  { %184 = dma.vmem_to_hbm [thread:$0]  %s179_s20, 6400, %s287_s1, [#allocation4], %s243_s16, %s243_s16, %s244_s17  }
  0x42   :  { %240 = dma.done.wait [#allocation4], 6400  }
  0x43   :  { %241 = vsyncadd [#allocation4], 4294960896 }
  0x44   :  { %188 = vsyncpa [#allocation3], 1 }
  0x45   :  { %189 = vsyncpa [#allocation4], 1 }

</bundles_post_ra>
